<compile_context>
chip_gen: v7x
topology: tpu7x:2x2x1
jax: 0.10.0
libtpu: 0.0.40
codegen_flags: <defaults>
</compile_context>

<pallas_src>
import jax
import jax.numpy as jnp
from jax.experimental import pallas as pl
from jax.experimental.pallas import tpu as pltpu

OBS_DIM = 30
ACT_DIM = 5
IN_DIM = OBS_DIM + ACT_DIM          # 35
HIDDEN_DIM = 128
NUM_GROUPS = 3
OUT_PAD = 8                         # small lane-padded output width (full-dim block)
DEFAULT_BLOCK_N = 1024              # batch tile; sweep 512-2048 per generation


def _round_up(x, m):
    return ((x + m - 1) // m) * m


def _mlp_kernel(obs_ref, act_ref, w1a_ref, w1b_ref, b1_ref,
                w2_ref, b2_ref, w3_ref, b3_ref, out_ref):
    # Layer 1: fused concat -> two matmuls (K=30 and K=5), f32 accumulation.
    h = (jnp.dot(obs_ref[...], w1a_ref[...], preferred_element_type=jnp.float32)
         + jnp.dot(act_ref[...], w1b_ref[...], preferred_element_type=jnp.float32)
         + b1_ref[...])
    h = jnp.maximum(h, 0.0).astype(jnp.bfloat16)

    # Layer 2: Linear + ReLU
    h = jnp.dot(h, w2_ref[...], preferred_element_type=jnp.float32) + b2_ref[...]
    h = jnp.maximum(h, 0.0).astype(jnp.bfloat16)

    # Layer 3: Linear (logit columns >= NUM_GROUPS are zero-padded)
    out_ref[...] = (jnp.dot(h, w3_ref[...], preferred_element_type=jnp.float32)
                    + b3_ref[...]).astype(out_ref.dtype)


def spread_grouping_mlp(obs, action, params, *, block_n=DEFAULT_BLOCK_N):
    """obs: [N, OBS_DIM], action: [N, ACT_DIM] -> logits [N, NUM_GROUPS] f32."""
    n = obs.shape[0]
    w1a, w1b, b1, w2, b2, w3p, b3p = params

    # bf16 at HBM ingress: halves input DMA; kernel accumulates in f32.
    obs = obs.astype(jnp.bfloat16)
    action = action.astype(jnp.bfloat16)

    # Adaptive batch tile:
    #  - big (up to block_n) to amortize the ~0.35 us/grid-step overhead,
    #  - capped so large batches get >= 2 grid steps (both v7x TensorCores),
    #  - shrunk (16-row aligned for bf16 sublane packing) for tiny batches.
    bn = min(block_n, _round_up(pl.cdiv(max(n, 1), 2), 512))
    bn = min(bn, _round_up(max(n, 1), 16))
    grid = (pl.cdiv(n, bn),)

    def const_spec(shape):
        return pl.BlockSpec(shape, lambda i: (0, 0))

    flops = 2 * n * (IN_DIM * HIDDEN_DIM
                     + HIDDEN_DIM * HIDDEN_DIM
                     + HIDDEN_DIM * OUT_PAD)
    bytes_accessed = (n * IN_DIM * 2              # bf16 obs + action
                      + n * OUT_PAD * 4           # f32 padded logits
                      + sum(int(p.size) * p.dtype.itemsize for p in params))

    out = pl.pallas_call(
        _mlp_kernel,
        out_shape=jax.ShapeDtypeStruct((n, OUT_PAD), jnp.float32),
        grid_spec=pltpu.PrefetchScalarGridSpec(
            num_scalar_prefetch=0,
            grid=grid,
            in_specs=[
                pl.BlockSpec((bn, OBS_DIM), lambda i: (i, 0)),   # obs tile (bf16)
                pl.BlockSpec((bn, ACT_DIM), lambda i: (i, 0)),   # action tile (bf16)
                const_spec((OBS_DIM, HIDDEN_DIM)),               # W1a (bf16)
                const_spec((ACT_DIM, HIDDEN_DIM)),               # W1b (bf16)
                const_spec((1, HIDDEN_DIM)),                     # b1 (f32)
                const_spec((HIDDEN_DIM, HIDDEN_DIM)),            # W2 (bf16)
                const_spec((1, HIDDEN_DIM)),                     # b2 (f32)
                const_spec((HIDDEN_DIM, OUT_PAD)),               # W3 padded (bf16)
                const_spec((1, OUT_PAD)),                        # b3 padded (f32)
            ],
            out_specs=pl.BlockSpec((bn, OUT_PAD), lambda i: (i, 0)),
        ),
        compiler_params=pltpu.CompilerParams(
            dimension_semantics=("parallel",)),
        cost_estimate=pl.CostEstimate(
            flops=flops, transcendentals=0, bytes_accessed=bytes_accessed),
    )(obs, action, w1a, w1b, b1, w2, b2, w3p, b3p)

    return out[:, :NUM_GROUPS]


def init_params(key):
    """f32 parameters, stored as [in_features, out_features] (W.T of PyTorch),
    mimicking nn.Linear default init (uniform +/- 1/sqrt(fan_in))."""
    k1, k2, k3, k4, k5, k6 = jax.random.split(key, 6)
    lim1 = 1.0 / jnp.sqrt(IN_DIM)
    lim2 = 1.0 / jnp.sqrt(HIDDEN_DIM)
    w1 = jax.random.uniform(k1, (IN_DIM, HIDDEN_DIM), jnp.float32, -lim1, lim1)
    b1 = jax.random.uniform(k2, (1, HIDDEN_DIM), jnp.float32, -lim1, lim1)
    w2 = jax.random.uniform(k3, (HIDDEN_DIM, HIDDEN_DIM), jnp.float32, -lim2, lim2)
    b2 = jax.random.uniform(k4, (1, HIDDEN_DIM), jnp.float32, -lim2, lim2)
    w3 = jax.random.uniform(k5, (HIDDEN_DIM, NUM_GROUPS), jnp.float32, -lim2, lim2)
    b3 = jax.random.uniform(k6, (1, NUM_GROUPS), jnp.float32, -lim2, lim2)
    return (w1, b1, w2, b2, w3, b3)


def prepare_params(params_f32):
    """Kernel-side params: bf16 weights, f32 biases.
    W1 split into obs/action halves (fused concat); W3/b3 zero-padded to 8 cols."""
    w1, b1, w2, b2, w3, b3 = params_f32
    w1a = w1[:OBS_DIM].astype(jnp.bfloat16)
    w1b = w1[OBS_DIM:].astype(jnp.bfloat16)
    w3p = (jnp.zeros((HIDDEN_DIM, OUT_PAD), jnp.float32)
           .at[:, :NUM_GROUPS].set(w3).astype(jnp.bfloat16))
    b3p = jnp.zeros((1, OUT_PAD), jnp.float32).at[:, :NUM_GROUPS].set(b3)
    return (w1a, w1b, b1, w2.astype(jnp.bfloat16), b2, w3p, b3p)


def reference_forward(obs, action, params_f32):
    """Exact f32 forward (matches the PyTorch module semantics)."""
    w1, b1, w2, b2, w3, b3 = params_f32
    x = jnp.concatenate([obs, action], axis=-1)
    h = jax.nn.relu(x @ w1 + b1)
    h = jax.nn.relu(h @ w2 + b2)
    return h @ w3 + b3


def reference_forward_bf16(obs, action, params_f32):
    """Emulates the kernel's bf16-operand / f32-accumulation numerics
    (including the split layer-1 matmul)."""
    w1, b1, w2, b2, w3, b3 = params_f32
    bf = jnp.bfloat16
    obs_b = obs.astype(bf)
    act_b = action.astype(bf)
    h = (jnp.dot(obs_b, w1[:OBS_DIM].astype(bf), preferred_element_type=jnp.float32)
         + jnp.dot(act_b, w1[OBS_DIM:].astype(bf), preferred_element_type=jnp.float32)
         + b1)
    h = jnp.maximum(h, 0.0).astype(bf)
    h = jnp.maximum(
        jnp.dot(h, w2.astype(bf), preferred_element_type=jnp.float32) + b2, 0.0).astype(bf)
    return jnp.dot(h, w3.astype(bf), preferred_element_type=jnp.float32) + b3


if __name__ == "__main__":
    key = jax.random.PRNGKey(0)
    kp, ko, ka = jax.random.split(key, 3)

    N = 16  # small demo batch; any N works (ragged last block handled by Pallas)
    obs = jax.random.normal(ko, (N, OBS_DIM), jnp.float32)
    action = jax.random.normal(ka, (N, ACT_DIM), jnp.float32)

    params_f32 = init_params(kp)
    params = prepare_params(params_f32)

    out = spread_grouping_mlp(obs, action, params)
    out = jax.block_until_ready(out)
    assert out.shape == (N, NUM_GROUPS)

    # Tight check vs a JAX reference that emulates the kernel's bf16/f32 numerics.
    ref_bf16 = reference_forward_bf16(obs, action, params_f32)
    assert jnp.allclose(out, ref_bf16, atol=2e-3, rtol=2e-3), "mismatch vs bf16 reference"

    # Loose check vs the exact f32 module (only bf16 rounding of weights/activations).
    # TODO(synk): confirm bf16 weights/activations are acceptable for the downstream
    # argmax/softmax over 3 logits; if not, keep params f32 (kernel stays mem-bound).
    ref_f32 = reference_forward(obs, action, params_f32)
    assert jnp.allclose(out, ref_f32, atol=5e-2, rtol=5e-2), "mismatch vs f32 reference"

    print("KERNEL_OK")
</pallas_src>

<mosaic_0001>
module attributes {stable_mosaic.version = 11 : i64} {
  func.func @_mlp_kernel(%arg0: i32, %arg1: memref<16x30xbf16, #tpu.memory_space<vmem>>, %arg2: memref<16x5xbf16, #tpu.memory_space<vmem>>, %arg3: memref<30x128xbf16, #tpu.memory_space<vmem>>, %arg4: memref<5x128xbf16, #tpu.memory_space<vmem>>, %arg5: memref<1x128xf32, #tpu.memory_space<vmem>>, %arg6: memref<128x128xbf16, #tpu.memory_space<vmem>>, %arg7: memref<1x128xf32, #tpu.memory_space<vmem>>, %arg8: memref<128x8xbf16, #tpu.memory_space<vmem>>, %arg9: memref<1x8xf32, #tpu.memory_space<vmem>>, %arg10: memref<16x8xf32, #tpu.memory_space<vmem>>) attributes {dimension_semantics = [#tpu.dimension_semantics<parallel>], iteration_bounds = array<i64: 1>, scalar_prefetch = 0 : i64, scratch_operands = 0 : i64, tpu.core_type = #tpu.core_type<tc>, window_params = [{transform_indices = @transform_0, window_bounds = array<i64: 16, 30>}, {transform_indices = @transform_1, window_bounds = array<i64: 16, 5>}, {pipeline_mode = #tpu.pipeline_mode<synchronous>, transform_indices = @transform_2, window_bounds = array<i64: 30, 128>}, {pipeline_mode = #tpu.pipeline_mode<synchronous>, transform_indices = @transform_3, window_bounds = array<i64: 5, 128>}, {pipeline_mode = #tpu.pipeline_mode<synchronous>, transform_indices = @transform_4, window_bounds = array<i64: 1, 128>}, {pipeline_mode = #tpu.pipeline_mode<synchronous>, transform_indices = @transform_5, window_bounds = array<i64: 128, 128>}, {pipeline_mode = #tpu.pipeline_mode<synchronous>, transform_indices = @transform_6, window_bounds = array<i64: 1, 128>}, {pipeline_mode = #tpu.pipeline_mode<synchronous>, transform_indices = @transform_7, window_bounds = array<i64: 128, 8>}, {pipeline_mode = #tpu.pipeline_mode<synchronous>, transform_indices = @transform_8, window_bounds = array<i64: 1, 8>}, {transform_indices = @transform_9, window_bounds = array<i64: 16, 8>}]} {
    %c0 = arith.constant 0 : index
    %c0_0 = arith.constant 0 : index
    %0 = vector.load %arg1[%c0, %c0_0] : memref<16x30xbf16, #tpu.memory_space<vmem>>, vector<16x30xbf16>
    %c0_1 = arith.constant 0 : index
    %c0_2 = arith.constant 0 : index
    %1 = vector.load %arg3[%c0_1, %c0_2] : memref<30x128xbf16, #tpu.memory_space<vmem>>, vector<30x128xbf16>
    %cst = arith.constant dense<0.000000e+00> : vector<16x128xf32>
    %2 = tpu.matmul %0, %1, %cst {dimension_numbers = #tpu.dot_dimension_numbers<[1], [0], [0], [1], [0, 0, 1, 1], [], []>} : vector<16x30xbf16>, vector<30x128xbf16>, vector<16x128xf32> -> vector<16x128xf32>
    %c0_3 = arith.constant 0 : index
    %c0_4 = arith.constant 0 : index
    %3 = vector.load %arg2[%c0_3, %c0_4] : memref<16x5xbf16, #tpu.memory_space<vmem>>, vector<16x5xbf16>
    %c0_5 = arith.constant 0 : index
    %c0_6 = arith.constant 0 : index
    %4 = vector.load %arg4[%c0_5, %c0_6] : memref<5x128xbf16, #tpu.memory_space<vmem>>, vector<5x128xbf16>
    %cst_7 = arith.constant dense<0.000000e+00> : vector<16x128xf32>
    %5 = tpu.matmul %3, %4, %cst_7 {dimension_numbers = #tpu.dot_dimension_numbers<[1], [0], [0], [1], [0, 0, 1, 1], [], []>} : vector<16x5xbf16>, vector<5x128xbf16>, vector<16x128xf32> -> vector<16x128xf32>
    %6 = arith.addf %2, %5 : vector<16x128xf32>
    %c0_8 = arith.constant 0 : index
    %c0_9 = arith.constant 0 : index
    %7 = vector.load %arg5[%c0_8, %c0_9] : memref<1x128xf32, #tpu.memory_space<vmem>>, vector<1x128xf32>
    %8 = vector.broadcast %7 : vector<1x128xf32> to vector<16x128xf32>
    %9 = arith.addf %6, %8 : vector<16x128xf32>
    %cst_10 = arith.constant 0.000000e+00 : f32
    %10 = vector.broadcast %cst_10 : f32 to vector<16x128xf32>
    %11 = arith.maximumf %9, %10 : vector<16x128xf32>
    %12 = arith.truncf %11 : vector<16x128xf32> to vector<16x128xbf16>
    %c0_11 = arith.constant 0 : index
    %c0_12 = arith.constant 0 : index
    %13 = vector.load %arg6[%c0_11, %c0_12] : memref<128x128xbf16, #tpu.memory_space<vmem>>, vector<128x128xbf16>
    %cst_13 = arith.constant dense<0.000000e+00> : vector<16x128xf32>
    %14 = tpu.matmul %12, %13, %cst_13 {dimension_numbers = #tpu.dot_dimension_numbers<[1], [0], [0], [1], [0, 0, 1, 1], [], []>} : vector<16x128xbf16>, vector<128x128xbf16>, vector<16x128xf32> -> vector<16x128xf32>
    %c0_14 = arith.constant 0 : index
    %c0_15 = arith.constant 0 : index
    %15 = vector.load %arg7[%c0_14, %c0_15] : memref<1x128xf32, #tpu.memory_space<vmem>>, vector<1x128xf32>
    %16 = vector.broadcast %15 : vector<1x128xf32> to vector<16x128xf32>
    %17 = arith.addf %14, %16 : vector<16x128xf32>
    %cst_16 = arith.constant 0.000000e+00 : f32
    %18 = vector.broadcast %cst_16 : f32 to vector<16x128xf32>
    %19 = arith.maximumf %17, %18 : vector<16x128xf32>
    %20 = arith.truncf %19 : vector<16x128xf32> to vector<16x128xbf16>
    %c0_17 = arith.constant 0 : index
    %c0_18 = arith.constant 0 : index
    %21 = vector.load %arg8[%c0_17, %c0_18] : memref<128x8xbf16, #tpu.memory_space<vmem>>, vector<128x8xbf16>
    %cst_19 = arith.constant dense<0.000000e+00> : vector<16x8xf32>
    %22 = tpu.matmul %20, %21, %cst_19 {dimension_numbers = #tpu.dot_dimension_numbers<[1], [0], [0], [1], [0, 0, 1, 1], [], []>} : vector<16x128xbf16>, vector<128x8xbf16>, vector<16x8xf32> -> vector<16x8xf32>
    %c0_20 = arith.constant 0 : index
    %c0_21 = arith.constant 0 : index
    %23 = vector.load %arg9[%c0_20, %c0_21] : memref<1x8xf32, #tpu.memory_space<vmem>>, vector<1x8xf32>
    %24 = vector.broadcast %23 : vector<1x8xf32> to vector<16x8xf32>
    %25 = arith.addf %22, %24 : vector<16x8xf32>
    %c0_22 = arith.constant 0 : index
    %c0_23 = arith.constant 0 : index
    %26 = vector.load %arg10[%c0_22, %c0_23] : memref<16x8xf32, #tpu.memory_space<vmem>>, vector<16x8xf32>
    tpu.vector_store %arg10[%c0_22, %c0_23], %25 {strides = array<i32>} : memref<16x8xf32, #tpu.memory_space<vmem>>, vector<16x8xf32>,
    return
  }
  func.func @transform_0(%arg0: i32) -> (i32, i32) {
    %c0_i32 = arith.constant 0 : i32
    %c0_i32_0 = arith.constant 0 : i32
    return %arg0, %c0_i32 : i32, i32
  }
  func.func @transform_1(%arg0: i32) -> (i32, i32) {
    %c0_i32 = arith.constant 0 : i32
    %c0_i32_0 = arith.constant 0 : i32
    return %arg0, %c0_i32 : i32, i32
  }
  func.func @transform_2(%arg0: i32) -> (i32, i32) {
    %c0_i32 = arith.constant 0 : i32
    %c0_i32_0 = arith.constant 0 : i32
    %c0_i32_1 = arith.constant 0 : i32
    return %c0_i32, %c0_i32_0 : i32, i32
  }
  func.func @transform_3(%arg0: i32) -> (i32, i32) {
    %c0_i32 = arith.constant 0 : i32
    %c0_i32_0 = arith.constant 0 : i32
    %c0_i32_1 = arith.constant 0 : i32
    return %c0_i32, %c0_i32_0 : i32, i32
  }
  func.func @transform_4(%arg0: i32) -> (i32, i32) {
    %c0_i32 = arith.constant 0 : i32
    %c0_i32_0 = arith.constant 0 : i32
    %c0_i32_1 = arith.constant 0 : i32
    return %c0_i32, %c0_i32_0 : i32, i32
  }
  func.func @transform_5(%arg0: i32) -> (i32, i32) {
    %c0_i32 = arith.constant 0 : i32
    %c0_i32_0 = arith.constant 0 : i32
    %c0_i32_1 = arith.constant 0 : i32
    return %c0_i32, %c0_i32_0 : i32, i32
  }
  func.func @transform_6(%arg0: i32) -> (i32, i32) {
    %c0_i32 = arith.constant 0 : i32
    %c0_i32_0 = arith.constant 0 : i32
    %c0_i32_1 = arith.constant 0 : i32
    return %c0_i32, %c0_i32_0 : i32, i32
  }
  func.func @transform_7(%arg0: i32) -> (i32, i32) {
    %c0_i32 = arith.constant 0 : i32
    %c0_i32_0 = arith.constant 0 : i32
    %c0_i32_1 = arith.constant 0 : i32
    return %c0_i32, %c0_i32_0 : i32, i32
  }
  func.func @transform_8(%arg0: i32) -> (i32, i32) {
    %c0_i32 = arith.constant 0 : i32
    %c0_i32_0 = arith.constant 0 : i32
    %c0_i32_1 = arith.constant 0 : i32
    return %c0_i32, %c0_i32_0 : i32, i32
  }
  func.func @transform_9(%arg0: i32) -> (i32, i32) {
    %c0_i32 = arith.constant 0 : i32
    %c0_i32_0 = arith.constant 0 : i32
    return %arg0, %c0_i32 : i32, i32
  }
}

</mosaic_0001>

<bundles_post_ra>
// kernel: tpu_custom_call.1
= control target key start
LH: loop header
LB: loop body
LE: loop exit
PB: predicated region body
PF: predicated region fallthrough
CT: control target
= control target key end

     0   :  { %vm51_vm0 = vcmask 1041408   ;;  %vm52_vm1 = vcmask 1042432   ;;  %v535_v0 = vmov 0.0   ;;  %v536_v2 = vmov 65535   ;;  %s693_s2 = inlined_call_operand.vmem [shape: bf16[30,128], index: 2, kind: input, shape index: {}]   ;;  %s694_s3 = inlined_call_operand.vmem [shape: bf16[5,128], index: 3, kind: input, shape index: {}]   ;;  %s695_s1 = inlined_call_operand.vmem [shape: bf16[16,5], index: 1, kind: input, shape index: {}]   ;;  %s696_s0 = inlined_call_operand.vmem [shape: bf16[16,30], index: 0, kind: input, shape index: {}]   ;;  %s697_s5 = inlined_call_operand.vmem [shape: bf16[128,128], index: 5, kind: input, shape index: {}]   ;;  %s698_s7 = inlined_call_operand.vmem [shape: bf16[128,8], index: 7, kind: input, shape index: {}]   ;;  %s699_s4 = inlined_call_operand.vmem [shape: f32[1,128], index: 4, kind: input, shape index: {}]   ;;  %s700_s6 = inlined_call_operand.vmem [shape: f32[1,128], index: 6, kind: input, shape index: {}]   ;;  %s701_s8 = inlined_call_operand.vmem [shape: f32[1,8], index: 8, kind: input, shape index: {}]   ;;  %s702_s9 = inlined_call_operand.vmem [shape: f32[16,8], index: 9, kind: output, shape index: {}]  }
   0x1   :  { %464 = vmatprep.subr.bf16.mxu1 %v535_v0  ;;  %458 = vmatprep.subr.bf16.mxu0 %v535_v0  ;;  %v515_v1 = vld [vmem:[%s693_s2] sm:$0xff]   ;;  %v53_v3 = vsel %vm51_vm0, 4294967295, %v536_v2  ;;  %vm537_vm2 = vmmov 0   ;;  %v517_v8 = vld [vmem:[%s693_s2 + $0x8] sm:$0x7f]   ;;  %vm119_vm3 = vcmask 1046528  }
   0x2   :  { %v41_v4 = vld [vmem:[%s694_s3] sm:$0x7]  ;;  %v54_v5 = vsel %vm52_vm1, %v53_v3, 0  ;;  %465 = vmatpush3.bf16.msra.mxu1 %v515_v1  ;;  %460 = vmatprep.mubr.msk.bf16.mxu0 %vm537_vm2, %v535_v0  ;;  %vm47_vm4 = vcmask 39936   ;;  %v121_v11 = vsel %vm119_vm3, %v517_v8, 0  ;;  %vm115_vm5 = vcmask 244736  }
   0x3   :  { %v56_v6 = vand.u32 %v54_v5, %v41_v4  ;;  %v516_v7 = vld [vmem:[%s695_s1] sm:$0xff]   ;;  %466 = vmatprep.subr.bf16.mxu1 %v535_v0  ;;  %468 = vmatprep.mubr.msk.bf16.mxu1 %vm537_vm2, %v535_v0  ;;  %v520_v12 = vld [vmem:[%s697_s5 + $0x8] sm:$0xff]   ;;  %v521_v13 = vld [vmem:[%s697_s5 + $0x10] sm:$0xff]   ;;  %vm403_vm6 = vcmask 64512  }
   0x4   :  { %v518_v9 = vld [vmem:[%s696_s0] sm:$0xff]   ;;  %v522_v14 = vld [vmem:[%s697_s5 + $0x18] sm:$0xff]   ;;  %v524_v16 = vld [vmem:[%s697_s5 + $0x28] sm:$0xff]  }
   0x5   :  { %459 = vmatpush3.bf16.msra.mxu0 %v56_v6  ;;  %v519_v10 = vld [vmem:[%s697_s5] sm:$0xff]   ;;  %v525_v17 = vld [vmem:[%s697_s5 + $0x30] sm:$0xff]   ;;  %v526_v18 = vld [vmem:[%s697_s5 + $0x38] sm:$0xff]  }
   0x6   :  { %472 = vmatprep.subr.bf16.mxu0 %v535_v0  ;;  %467 = vmatpush3.bf16.msra.mxu1 %v121_v11  ;;  %v523_v15 = vld [vmem:[%s697_s5 + $0x20] sm:$0xff]   ;;  %v528_v20 = vld [vmem:[%s698_s7 + $0x8] sm:$0xff]   ;;  %v529_v21 = vld [vmem:[%s698_s7 + $0x10] sm:$0xff]  }
   0x7   :  { %492 = vmatprep.subr.bf16.mxu1 %v535_v0  ;;  %v527_v19 = vld [vmem:[%s698_s7] sm:$0xff]   ;;  %v530_v22 = vld [vmem:[%s698_s7 + $0x18] sm:$0xff]   ;;  %v532_v24 = vld [vmem:[%s698_s7 + $0x28] sm:$0xff]  }
   0x8   :  { %461 = vmatmul.mubr.msk.bf16.vlgmr.msra.gmra.mrb[0].mxu0 %vm47_vm4, %v516_v7  ;;  %v531_v23 = vld [vmem:[%s698_s7 + $0x20] sm:$0xff]   ;;  %v533_v41 = vld [vmem:[%s698_s7 + $0x30] sm:$0xff]   ;;  %v534_v42 = vld [vmem:[%s698_s7 + $0x38] sm:$0xff]  }
   0x9   :  { %473 = vmatpush3.bf16.msra.mxu0 %v519_v10  ;;  %488 = vmatprep.mubr.msk.bf16.mxu0 %vm537_vm2, %v535_v0  ;;  %v416_v29 = vld [vmem:[%s699_s4] ss:$0 sm:$0xff] }
   0xa   :  { %469 = vmatmul.mubr.msk.bf16.vlgmr.msra.gmra.mrb[0].mxu1 %vm115_vm5, %v518_v9  ;;  %474 = vmatprep.subr.bf16.mxu0 %v535_v0  ;;  %v417_v43 = vld [vmem:[%s700_s6] ss:$0 sm:$0xff] }
   0xb   :  { %508 = vmatprep.mubr.msk.bf16.mxu1 %vm537_vm2, %v535_v0  ;;  %493 = vmatpush3.bf16.msra.mxu1 %v527_v19  ;;  %v426_v53 = vld [vmem:[%s701_s8] ss:$0 sm:$0xff] }
   0xc   :  { %494 = vmatprep.subr.bf16.mxu1 %v535_v0 }
   0xd   :  { %475 = vmatpush3.bf16.msra.mxu0 %v520_v12 }
   0xe   :  { %476 = vmatprep.subr.bf16.mxu0 %v535_v0 }
   0xf   :  { %495 = vmatpush3.bf16.msra.mxu1 %v528_v20 }
  0x10   :  { %496 = vmatprep.subr.bf16.mxu1 %v535_v0 }
  0x11   :  { %477 = vmatpush3.bf16.msra.mxu0 %v521_v13 }
  0x12   :  { %478 = vmatprep.subr.bf16.mxu0 %v535_v0 }
  0x13   :  { %497 = vmatpush3.bf16.msra.mxu1 %v529_v21 }
  0x14   :  { %498 = vmatprep.subr.bf16.mxu1 %v535_v0 }
  0x15   :  { %479 = vmatpush3.bf16.msra.mxu0 %v522_v14 }
  0x16   :  { %480 = vmatprep.subr.bf16.mxu0 %v535_v0 }
  0x17   :  { %499 = vmatpush3.bf16.msra.mxu1 %v530_v22 }
  0x18   :  { %500 = vmatprep.subr.bf16.mxu1 %v535_v0 }
  0x19   :  { %481 = vmatpush3.bf16.msra.mxu0 %v523_v15 }
  0x1a   :  { %482 = vmatprep.subr.bf16.mxu0 %v535_v0 }
  0x1b   :  { %501 = vmatpush3.bf16.msra.mxu1 %v531_v23 }
  0x1c   :  { %502 = vmatprep.subr.bf16.mxu1 %v535_v0 }
  0x1d   :  { %483 = vmatpush3.bf16.msra.mxu0 %v524_v16 }
  0x1e   :  { %484 = vmatprep.subr.bf16.mxu0 %v535_v0 }
  0x1f   :  { %503 = vmatpush3.bf16.msra.mxu1 %v532_v24 }
  0x20   :  { %504 = vmatprep.subr.bf16.mxu1 %v535_v0 }
  0x21   :  { %485 = vmatpush3.bf16.msra.mxu0 %v525_v17 }
  0x22   :  { %486 = vmatprep.subr.bf16.mxu0 %v535_v0 }
  0x23   :  { %505 = vmatpush3.bf16.msra.mxu1 %v533_v41 }
  0x24   :  { %506 = vmatprep.subr.bf16.mxu1 %v535_v0 }
  0x25   :  { %487 = vmatpush3.bf16.msra.mxu0 %v526_v18 }
  0x27   :  { %507 = vmatpush3.bf16.msra.mxu1 %v534_v42 }
  0xdb   :  { %v92_v25 = vpop.f32.mrb[0].mxu0 }
  0xdc   :  { %v462_v26 = vpop.f32.mrb[1].mxu0 }
  0xdd   :  { %v95_v27 = vpop.f32.mrb[2].mxu0  ;;  %v157_v28 = vpop.f32.mrb[0].mxu1 }
  0xde   :  { %v463_v30 = vpop.f32.mrb[3].mxu0  ;;  %v158_v31 = vadd.f32 %v157_v28, %v92_v25  ;;  %v470_v32 = vpop.f32.mrb[1].mxu1 }
  0xdf   :  { %v160_v33 = vpop.f32.mrb[2].mxu1 }
  0xe0   :  { %v171_v34 = vadd.f32 %v416_v29, %v158_v31  ;;  %v161_v35 = vadd.f32 %v160_v33, %v95_v27  ;;  %v471_v36 = vpop.f32.mrb[3].mxu1 }
  0xe2   :  { %v172_v37 = vadd.f32 %v416_v29, %v161_v35  ;;  %v173_v38 = vmax.f32 %v171_v34, 0.0 }
  0xe4   :  { %v174_v39 = vmax.f32 %v172_v37, 0.0 }
  0xe6   :  { %v175_v40 = vpack.c.bf16 %v174_v39, %v173_v38 }
  0xe8   :  { %489 = vmatmul.mubr.bf16.vlgmr.msra.gmra.mrb[4].mxu0 %v175_v40 }
 0x1bb   :  { %v281_v44 = vpop.f32.mrb[4].mxu0 }
 0x1bc   :  { %v282_v45 = vadd.f32 %v417_v43, %v281_v44  ;;  %v490_v46 = vpop.f32.mrb[5].mxu0 }
 0x1bd   :  { %v284_v47 = vpop.f32.mrb[6].mxu0 }
 0x1be   :  { %v285_v48 = vadd.f32 %v417_v43, %v284_v47  ;;  %v491_v49 = vpop.f32.mrb[7].mxu0  ;;  %v288_v50 = vmax.f32 %v282_v45, 0.0 }
 0x1c0   :  { %v289_v51 = vmax.f32 %v285_v48, 0.0 }
 0x1c2   :  { %v290_v52 = vpack.c.bf16 %v289_v51, %v288_v50 }
 0x1c4   :  { %509 = vmatmul.mubr.bf16.vlgmr.msra.gmra.mrb[4].mxu1 %v290_v52 }
 0x297   :  { %v396_v54 = vpop.f32.mrb[4].mxu1 }
 0x298   :  { %v397_v55 = vadd.f32 %v426_v53, %v396_v54  ;;  %v510_v56 = vpop.f32.mrb[5].mxu1 }
 0x299   :  { %v399_v57 = vpop.f32.mrb[6].mxu1 }
 0x29a   :  { %404 = vst.msk [vmem:[%s702_s9] sm:$0xff] %vm403_vm6, %v397_v55  ;;  %v400_v58 = vadd.f32 %v426_v53, %v399_v57  ;;  %v511_v59 = vpop.f32.mrb[7].mxu1 }
 0x29c   :  { %405 = vst.msk [vmem:[%s702_s9 + $0x8] sm:$0xff] %vm403_vm6, %v400_v58 }

</bundles_post_ra>
